<compile_context>
chip_gen: v6e
topology: v6e:2x2x1
jax: 0.10.0
libtpu: 0.0.40
codegen_flags: <defaults>
</compile_context>

<pallas_src>
import functools

import jax
import jax.numpy as jnp
from jax import lax
from jax.experimental import pallas as pl
from jax.experimental.pallas import tpu as pltpu

EPS = 1e-5
_LANE = 128
_SUBLANE = 8


def _round_up(n, m):
    return ((n + m - 1) // m) * m


def _pick_tile(n, pref):
    """Largest multiple of 128 that divides n and is <= pref (n is a 128-multiple)."""
    if n <= pref:
        return n
    t = (pref // _LANE) * _LANE
    while n % t:
        t -= _LANE
    return t


def _vmem_limit(per_step_block_bytes):
    # double-buffered blocks + headroom, clamped to a range safe on v5e..v7x.
    return int(min(max(2 * per_step_block_bytes + (2 << 20), 32 << 20), 64 << 20))


# --------------------------------------------------------------------------
# Kernel 1: Linear -> BatchNorm1d (training-mode batch stats) -> ReLU
# Grid: hidden-feature tiles ("parallel"). Full batch resident per tile.
# --------------------------------------------------------------------------
def _layer1_kernel(x_ref, w1_ref, b1_ref, g_ref, beta_ref, h_ref,
                   *, n_valid_rows, compute_dtype):
    x = x_ref[...]
    w1 = w1_ref[...]
    if compute_dtype is not None:          # bf16 MXU operands on v6e/v7x
        x = x.astype(compute_dtype)
        w1 = w1.astype(compute_dtype)
    h = jnp.dot(x, w1, preferred_element_type=jnp.float32) + b1_ref[...]

    bp = h.shape[0]
    if n_valid_rows != bp:
        # Batch was padded to a sublane multiple: mask padded rows out of the stats.
        row_ids = lax.broadcasted_iota(jnp.int32, h.shape, 0)
        mask = row_ids < n_valid_rows
        mean = jnp.sum(jnp.where(mask, h, 0.0), axis=0, keepdims=True) / n_valid_rows
        cen = h - mean
        var = jnp.sum(jnp.where(mask, cen * cen, 0.0), axis=0, keepdims=True) / n_valid_rows
    else:
        mean = jnp.mean(h, axis=0, keepdims=True)
        cen = h - mean
        var = jnp.mean(cen * cen, axis=0, keepdims=True)   # biased, as nn.BatchNorm1d

    h_bn = cen * lax.rsqrt(var + EPS) * g_ref[...] + beta_ref[...]
    h_ref[...] = jnp.maximum(h_bn, 0.0).astype(h_ref.dtype)


# --------------------------------------------------------------------------
# Kernel 2: Linear (h_relu @ w2 + b2)
# Grid: (D_out tiles "parallel") x (H tiles "arbitrary" reduction), f32 accumulator.
# --------------------------------------------------------------------------
def _layer2_kernel(h_ref, w2_ref, b2_ref, o_ref, acc_ref, *, compute_dtype):
    k = pl.program_id(1)

    @pl.when(k == 0)
    def _():
        acc_ref[...] = jnp.zeros_like(acc_ref)

    h = h_ref[...]
    w2 = w2_ref[...]
    if compute_dtype is not None:
        h = h.astype(compute_dtype)
        w2 = w2.astype(compute_dtype)
    acc_ref[...] += jnp.dot(h, w2, preferred_element_type=jnp.float32)

    @pl.when(k == pl.num_programs(1) - 1)
    def _():
        o_ref[...] = (acc_ref[...] + b2_ref[...]).astype(o_ref.dtype)


def prediction_mlp_forward(x, w1, b1, gamma, beta, w2, b2, *,
                           matmul_dtype=None,
                           hidden_tile=512, out_tile=512, k_tile=512):
    """SimSiam prediction_MLP forward.

    x: [B, D_in] f32; w1: [D_in, H]; b1/gamma/beta: [H]; w2: [H, D_out]; b2: [D_out].
    matmul_dtype=jnp.bfloat16 casts only the dot operands (recommended on v6e/v7x);
    BN/ReLU and accumulation remain f32. Returns [B, D_out] f32.
    """
    B, D_in = x.shape
    Din_w, H = w1.shape
    H_w, D_out = w2.shape
    assert Din_w == D_in and H_w == H

    # Lane/sublane-dense padding (zero columns/rows are mathematically inert,
    # padded outputs are sliced off below).
    Bp = _round_up(B, _SUBLANE)
    Dip = _round_up(D_in, _LANE)
    Hp = _round_up(H, _LANE)
    Dop = _round_up(D_out, _LANE)

    f32 = jnp.float32
    xp = jnp.zeros((Bp, Dip), f32).at[:B, :D_in].set(x.astype(f32))
    w1p = jnp.zeros((Dip, Hp), f32).at[:D_in, :H].set(w1.astype(f32))
    b1p = jnp.zeros((1, Hp), f32).at[0, :H].set(b1.reshape(-1).astype(f32))
    gp = jnp.zeros((1, Hp), f32).at[0, :H].set(gamma.reshape(-1).astype(f32))
    bep = jnp.zeros((1, Hp), f32).at[0, :H].set(beta.reshape(-1).astype(f32))
    w2p = jnp.zeros((Hp, Dop), f32).at[:H, :D_out].set(w2.astype(f32))
    b2p = jnp.zeros((1, Dop), f32).at[0, :D_out].set(b2.reshape(-1).astype(f32))

    tH = _pick_tile(Hp, hidden_tile)
    tDo = _pick_tile(Dop, out_tile)
    tK = _pick_tile(Hp, k_tile)

    # ---------------- layer1: Linear + BN + ReLU ----------------
    k1 = functools.partial(_layer1_kernel, n_valid_rows=B, compute_dtype=matmul_dtype)
    l1_step_bytes = 4 * (Bp * Dip + Dip * tH + 3 * tH + Bp * tH)
    h_relu = pl.pallas_call(
        k1,
        out_shape=jax.ShapeDtypeStruct((Bp, Hp), f32),
        grid=(Hp // tH,),
        in_specs=[
            pl.BlockSpec((Bp, Dip), lambda j: (0, 0)),   # x: full batch+features, fetched once
            pl.BlockSpec((Dip, tH), lambda j: (0, j)),   # w1 column tile
            pl.BlockSpec((1, tH), lambda j: (0, j)),     # b1
            pl.BlockSpec((1, tH), lambda j: (0, j)),     # gamma
            pl.BlockSpec((1, tH), lambda j: (0, j)),     # beta
        ],
        out_specs=pl.BlockSpec((Bp, tH), lambda j: (0, j)),
        compiler_params=pltpu.CompilerParams(
            dimension_semantics=("parallel",),
            vmem_limit_bytes=_vmem_limit(l1_step_bytes)),
        cost_estimate=pl.CostEstimate(
            flops=2 * Bp * Dip * Hp + 8 * Bp * Hp,
            transcendentals=Hp,
            bytes_accessed=4 * (Bp * Dip + Dip * Hp + 3 * Hp + Bp * Hp)),
    )(xp, w1p, b1p, gp, bep)

    # ---------------- layer2: Linear ----------------
    k2 = functools.partial(_layer2_kernel, compute_dtype=matmul_dtype)
    l2_step_bytes = 4 * (Bp * tK + tK * tDo + tDo + 2 * Bp * tDo)
    out = pl.pallas_call(
        k2,
        out_shape=jax.ShapeDtypeStruct((Bp, Dop), f32),
        grid=(Dop // tDo, Hp // tK),
        in_specs=[
            pl.BlockSpec((Bp, tK), lambda j, k: (0, k)),     # h_relu K tile
            pl.BlockSpec((tK, tDo), lambda j, k: (k, j)),    # w2 tile
            pl.BlockSpec((1, tDo), lambda j, k: (0, j)),     # b2 tile
        ],
        out_specs=pl.BlockSpec((Bp, tDo), lambda j, k: (0, j)),
        scratch_shapes=[pltpu.VMEM((Bp, tDo), jnp.float32)],
        compiler_params=pltpu.CompilerParams(
            dimension_semantics=("parallel", "arbitrary"),
            vmem_limit_bytes=_vmem_limit(l2_step_bytes)),
        cost_estimate=pl.CostEstimate(
            flops=2 * Bp * Hp * Dop,
            transcendentals=0,
            bytes_accessed=4 * (Bp * Hp + Hp * Dop + Dop + Bp * Dop)),
    )(h_relu, w2p, b2p)

    return out[:B, :D_out]


# ---------------- pure-JAX reference (training-mode BN, biased var) ----------------
def _reference(x, w1, b1, gamma, beta, w2, b2):
    h = x @ w1 + b1[None, :]
    mean = jnp.mean(h, axis=0, keepdims=True)
    var = jnp.mean((h - mean) ** 2, axis=0, keepdims=True)
    h = (h - mean) / jnp.sqrt(var + EPS) * gamma[None, :] + beta[None, :]
    h = jnp.maximum(h, 0.0)
    return h @ w2 + b2[None, :]


if __name__ == "__main__":
    def run_case(key, B, D_in, H, D_out):
        kx, kw1, kb1, kw2, kb2 = jax.random.split(key, 5)
        x = jax.random.normal(kx, (B, D_in), jnp.float32)
        lim1 = 1.0 / float(D_in) ** 0.5
        lim2 = 1.0 / float(H) ** 0.5
        w1 = jax.random.uniform(kw1, (D_in, H), jnp.float32, -lim1, lim1)
        b1 = jax.random.uniform(kb1, (H,), jnp.float32, -lim1, lim1)
        gamma = jnp.ones((H,), jnp.float32)     # fresh nn.BatchNorm1d
        beta = jnp.zeros((H,), jnp.float32)
        w2 = jax.random.uniform(kw2, (H, D_out), jnp.float32, -lim2, lim2)
        b2 = jax.random.uniform(kb2, (D_out,), jnp.float32, -lim2, lim2)

        out = prediction_mlp_forward(x, w1, b1, gamma, beta, w2, b2)
        out = jax.block_until_ready(out)
        ref = _reference(x, w1, b1, gamma, beta, w2, b2)
        assert out.shape == (B, D_out)
        assert jnp.allclose(out, ref, atol=1e-3, rtol=1e-3), (
            f"mismatch vs JAX reference for shapes B={B} D_in={D_in} H={H} D_out={D_out}")

    key = jax.random.PRNGKey(0)
    ka, kb = jax.random.split(key)
    # Small bottleneck shapes consistent with the module (in == out, hidden = in/4).
    run_case(ka, B=32, D_in=256, H=64, D_out=256)   # aligned batch, padded hidden dim
    run_case(kb, B=20, D_in=96, H=48, D_out=160)    # exercises every padding path (incl. batch mask)

    print("KERNEL_OK")
</pallas_src>

<mosaic_0001>
module attributes {stable_mosaic.version = 11 : i64} {
  func.func @_layer1_kernel(%arg0: i32, %arg1: memref<32x256xf32, #tpu.memory_space<vmem>>, %arg2: memref<256x128xf32, #tpu.memory_space<vmem>>, %arg3: memref<1x128xf32, #tpu.memory_space<vmem>>, %arg4: memref<1x128xf32, #tpu.memory_space<vmem>>, %arg5: memref<1x128xf32, #tpu.memory_space<vmem>>, %arg6: memref<32x128xf32, #tpu.memory_space<vmem>>) attributes {dimension_semantics = [#tpu.dimension_semantics<parallel>], iteration_bounds = array<i64: 1>, scalar_prefetch = 0 : i64, scratch_operands = 0 : i64, tpu.core_type = #tpu.core_type<tc>, window_params = [{pipeline_mode = #tpu.pipeline_mode<synchronous>, transform_indices = @transform_0, window_bounds = array<i64: 32, 256>}, {transform_indices = @transform_1, window_bounds = array<i64: 256, 128>}, {transform_indices = @transform_2, window_bounds = array<i64: 1, 128>}, {transform_indices = @transform_3, window_bounds = array<i64: 1, 128>}, {transform_indices = @transform_4, window_bounds = array<i64: 1, 128>}, {transform_indices = @transform_5, window_bounds = array<i64: 32, 128>}]} {
    %c0 = arith.constant 0 : index
    %c0_0 = arith.constant 0 : index
    %0 = vector.load %arg1[%c0, %c0_0] : memref<32x256xf32, #tpu.memory_space<vmem>>, vector<32x256xf32>
    %c0_1 = arith.constant 0 : index
    %c0_2 = arith.constant 0 : index
    %1 = vector.load %arg2[%c0_1, %c0_2] : memref<256x128xf32, #tpu.memory_space<vmem>>, vector<256x128xf32>
    %cst = arith.constant dense<0.000000e+00> : vector<32x128xf32>
    %2 = tpu.matmul %0, %1, %cst {dimension_numbers = #tpu.dot_dimension_numbers<[1], [0], [0], [1], [0, 0, 1, 1], [], []>} : vector<32x256xf32>, vector<256x128xf32>, vector<32x128xf32> -> vector<32x128xf32>
    %c0_3 = arith.constant 0 : index
    %c0_4 = arith.constant 0 : index
    %3 = vector.load %arg3[%c0_3, %c0_4] : memref<1x128xf32, #tpu.memory_space<vmem>>, vector<1x128xf32>
    %4 = vector.broadcast %3 : vector<1x128xf32> to vector<32x128xf32>
    %5 = arith.addf %2, %4 : vector<32x128xf32>
    %cst_5 = arith.constant dense<0.000000e+00> : vector<128xf32>
    %6 = vector.multi_reduction <add>, %5, %cst_5 [0] : vector<32x128xf32> to vector<128xf32>
    %7 = vector.shape_cast %6 : vector<128xf32> to vector<1x128xf32>
    %cst_6 = arith.constant 3.200000e+01 : f32
    %8 = vector.broadcast %cst_6 : f32 to vector<1x128xf32>
    %9 = arith.divf %7, %8 : vector<1x128xf32>
    %10 = vector.broadcast %9 : vector<1x128xf32> to vector<32x128xf32>
    %11 = arith.subf %5, %10 : vector<32x128xf32>
    %12 = arith.mulf %11, %11 : vector<32x128xf32>
    %cst_7 = arith.constant dense<0.000000e+00> : vector<128xf32>
    %13 = vector.multi_reduction <add>, %12, %cst_7 [0] : vector<32x128xf32> to vector<128xf32>
    %14 = vector.shape_cast %13 : vector<128xf32> to vector<1x128xf32>
    %cst_8 = arith.constant 3.200000e+01 : f32
    %15 = vector.broadcast %cst_8 : f32 to vector<1x128xf32>
    %16 = arith.divf %14, %15 : vector<1x128xf32>
    %cst_9 = arith.constant 9.99999974E-6 : f32
    %17 = vector.broadcast %cst_9 : f32 to vector<1x128xf32>
    %18 = arith.addf %16, %17 : vector<1x128xf32>
    %19 = math.rsqrt %18 : vector<1x128xf32>
    %20 = vector.broadcast %19 : vector<1x128xf32> to vector<32x128xf32>
    %21 = arith.mulf %11, %20 : vector<32x128xf32>
    %c0_10 = arith.constant 0 : index
    %c0_11 = arith.constant 0 : index
    %22 = vector.load %arg4[%c0_10, %c0_11] : memref<1x128xf32, #tpu.memory_space<vmem>>, vector<1x128xf32>
    %23 = vector.broadcast %22 : vector<1x128xf32> to vector<32x128xf32>
    %24 = arith.mulf %21, %23 : vector<32x128xf32>
    %c0_12 = arith.constant 0 : index
    %c0_13 = arith.constant 0 : index
    %25 = vector.load %arg5[%c0_12, %c0_13] : memref<1x128xf32, #tpu.memory_space<vmem>>, vector<1x128xf32>
    %26 = vector.broadcast %25 : vector<1x128xf32> to vector<32x128xf32>
    %27 = arith.addf %24, %26 : vector<32x128xf32>
    %cst_14 = arith.constant 0.000000e+00 : f32
    %28 = vector.broadcast %cst_14 : f32 to vector<32x128xf32>
    %29 = arith.maximumf %27, %28 : vector<32x128xf32>
    %c0_15 = arith.constant 0 : index
    %c0_16 = arith.constant 0 : index
    %30 = vector.load %arg6[%c0_15, %c0_16] : memref<32x128xf32, #tpu.memory_space<vmem>>, vector<32x128xf32>
    tpu.vector_store %arg6[%c0_15, %c0_16], %29 {strides = array<i32>} : memref<32x128xf32, #tpu.memory_space<vmem>>, vector<32x128xf32>,
    return
  }
  func.func @transform_0(%arg0: i32) -> (i32, i32) {
    %c0_i32 = arith.constant 0 : i32
    %c0_i32_0 = arith.constant 0 : i32
    %c0_i32_1 = arith.constant 0 : i32
    return %c0_i32, %c0_i32_0 : i32, i32
  }
  func.func @transform_1(%arg0: i32) -> (i32, i32) {
    %c0_i32 = arith.constant 0 : i32
    %c0_i32_0 = arith.constant 0 : i32
    return %c0_i32, %arg0 : i32, i32
  }
  func.func @transform_2(%arg0: i32) -> (i32, i32) {
    %c0_i32 = arith.constant 0 : i32
    %c0_i32_0 = arith.constant 0 : i32
    return %c0_i32, %arg0 : i32, i32
  }
  func.func @transform_3(%arg0: i32) -> (i32, i32) {
    %c0_i32 = arith.constant 0 : i32
    %c0_i32_0 = arith.constant 0 : i32
    return %c0_i32, %arg0 : i32, i32
  }
  func.func @transform_4(%arg0: i32) -> (i32, i32) {
    %c0_i32 = arith.constant 0 : i32
    %c0_i32_0 = arith.constant 0 : i32
    return %c0_i32, %arg0 : i32, i32
  }
  func.func @transform_5(%arg0: i32) -> (i32, i32) {
    %c0_i32 = arith.constant 0 : i32
    %c0_i32_0 = arith.constant 0 : i32
    return %c0_i32, %arg0 : i32, i32
  }
}

</mosaic_0001>

<bundles_post_ra>
// kernel: tpu_custom_call.1
= control target key start
LH: loop header
LB: loop body
LE: loop exit
PB: predicated region body
PF: predicated region fallthrough
CT: control target
= control target key end

     0   :  { %10 = vsyncpa [#allocation3], 0  ;;  %s479_s0 = inlined_call_operand.hbm [shape: f32[32,256], index: 0, kind: input, shape index: {}]   ;;  %s480_s1 = inlined_call_operand.hbm [shape: f32[256,128], index: 1, kind: input, shape index: {}]   ;;  %s481_s2 = inlined_call_operand.vmem [shape: f32[1,128], index: 2, kind: input, shape index: {}]   ;;  %s482_s3 = inlined_call_operand.vmem [shape: f32[1,128], index: 3, kind: input, shape index: {}]   ;;  %s483_s4 = inlined_call_operand.vmem [shape: f32[1,128], index: 4, kind: input, shape index: {}]   ;;  %s484_s5 = inlined_call_operand.hbm [shape: f32[32,128], index: 5, kind: output, shape index: {}]  }
   0x1   :  { %11 = vsyncpa [#allocation6], 0 }
   0x2   :  { %12 = vsyncpa [#allocation4], 0  ;;  %s418_s18 = smov [#allocation2]  }
   0x3   :  { %s18_s19 = sshll.u32 %s418_s18, 4  ;;  %s19_s19 = int_to_ptr.vmem [resolvable:$true] %s18_s19 }
   0x4   :  { %s360_s20 = scalar_lea.vmem %s19_s19, 1024  ;;  %p365_p1 = scmp.lt.s32.totalorder %s19_s19, %s19_s19 }
   0x5   :  { %p361_p0 = scmp.ne.s32.totalorder %s19_s19, %s360_s20  ;;  %p366_p2 = scmp.lt.s32.totalorder %s360_s20, %s360_s20 }
   0x7   :  { %p367_p3 = por %p366_p2, %p365_p1 }
   0x9   :  { %p368_p4 = pnand %p367_p3, %p361_p0 }
   0xb   :  { %371 = shalt.err (!%p368_p4)
}
   0xc   :  { %s419_s21 = smov 256   ;;  %s420_s22 = smov 16  }
   0xd   :  { %24 = dma.hbm_to_vmem [thread:$0]  %s479_s0, 1024, %s19_s19, [#allocation3], %s419_s21, %s419_s21, %s420_s22  }
   0xe   :  { %s421_s25 = smov [#allocation5]  }
   0xf   :  { %s30_s26 = sshll.u32 %s421_s25, 4  ;;  %s31_s26 = int_to_ptr.vmem [resolvable:$true] %s30_s26 }
  0x10   :  { %s380_s27 = scalar_lea.vmem %s31_s26, 4096  ;;  %p385_p6 = scmp.lt.s32.totalorder %s31_s26, %s31_s26 }
  0x11   :  { %p381_p5 = scmp.ne.s32.totalorder %s31_s26, %s380_s27  ;;  %p386_p7 = scmp.lt.s32.totalorder %s380_s27, %s380_s27 }
  0x13   :  { %p387_p8 = por %p386_p7, %p385_p6 }
  0x15   :  { %p388_p9 = pnand %p387_p8, %p381_p5 }
  0x17   :  { %391 = shalt.err (!%p388_p9)
}
  0x18   :  { %s422_s28 = smov 128   ;;  %s423_s29 = smov 8  }
  0x19   :  { %36 = dma.hbm_to_vmem [thread:$0]  %s480_s1, 4096, %s31_s26, [#allocation6], %s422_s28, %s422_s28, %s423_s29  }
  0x1a   :  { %412 = dma.done.wait [#allocation3], 1024  }
  0x1b   :  { %413 = vsyncadd [#allocation3], 4294966272 }
  0x1c   :  { %414 = dma.done.wait [#allocation6], 4096  }
  0x1d   :  { %415 = vsyncadd [#allocation6], 4294963200  ;;  %v88_v0 = vld [vmem:[#allocation5 + $0xf8] sm:$0xff]  ;;  %v87_v2 = vld [vmem:[#allocation5 + $0xf0] sm:$0xff]  ;;  %s424_s10 = smov [#allocation7]  }
  0x1e   :  { %v72_v1 = vld [vmem:[#allocation5 + $0x78] sm:$0xff]  ;;  %267 = vmatprep.subr.mxu0 %v88_v0  ;;  %311 = vmatprep.subr.mxu1 %v88_v0  ;;  %v71_v3 = vld [vmem:[#allocation5 + $0x70] sm:$0xff]  ;;  %v86_v4 = vld [vmem:[#allocation5 + $0xe8] sm:$0xff]  ;;  %s251_s11 = sshll.u32 %s424_s10, 4  ;;  %s252_s11 = int_to_ptr.vmem [resolvable:$true] %s251_s11 }
  0x1f   :  { %268 = vmatpush3.msra.mxu0 %v72_v1  ;;  %327 = vmatpush3.msra.mxu1 %v72_v1  ;;  %v70_v5 = vld [vmem:[#allocation5 + $0x68] sm:$0xff]  ;;  %v85_v6 = vld [vmem:[#allocation5 + $0xe0] sm:$0xff]  ;;  %v84_v8 = vld [vmem:[#allocation5 + $0xd8] sm:$0xff]  ;;  %p397_p11 = scmp.lt.s32.totalorder %s252_s11, %s252_s11 }
  0x20   :  { %269 = vmatprep.subr.mxu0 %v87_v2  ;;  %312 = vmatprep.subr.mxu1 %v87_v2  ;;  %v69_v7 = vld [vmem:[#allocation5 + $0x60] sm:$0xff]  ;;  %v68_v9 = vld [vmem:[#allocation5 + $0x58] sm:$0xff]  ;;  %v83_v10 = vld [vmem:[#allocation5 + $0xd0] sm:$0xff] }
  0x21   :  { %270 = vmatpush3.msra.mxu0 %v71_v3  ;;  %328 = vmatpush3.msra.mxu1 %v71_v3  ;;  %v67_v11 = vld [vmem:[#allocation5 + $0x50] sm:$0xff]  ;;  %v82_v12 = vld [vmem:[#allocation5 + $0xc8] sm:$0xff]  ;;  %v81_v14 = vld [vmem:[#allocation5 + $0xc0] sm:$0xff] }
  0x22   :  { %271 = vmatprep.subr.mxu0 %v86_v4  ;;  %313 = vmatprep.subr.mxu1 %v86_v4  ;;  %v66_v13 = vld [vmem:[#allocation5 + $0x48] sm:$0xff]  ;;  %v65_v15 = vld [vmem:[#allocation5 + $0x40] sm:$0xff]  ;;  %v80_v16 = vld [vmem:[#allocation5 + $0xb8] sm:$0xff] }
  0x23   :  { %272 = vmatpush3.msra.mxu0 %v70_v5  ;;  %329 = vmatpush3.msra.mxu1 %v70_v5  ;;  %v64_v17 = vld [vmem:[#allocation5 + $0x38] sm:$0xff]  ;;  %v79_v18 = vld [vmem:[#allocation5 + $0xb0] sm:$0xff]  ;;  %v78_v20 = vld [vmem:[#allocation5 + $0xa8] sm:$0xff] }
  0x24   :  { %273 = vmatprep.subr.mxu0 %v85_v6  ;;  %314 = vmatprep.subr.mxu1 %v85_v6  ;;  %v63_v19 = vld [vmem:[#allocation5 + $0x30] sm:$0xff]  ;;  %v62_v21 = vld [vmem:[#allocation5 + $0x28] sm:$0xff]  ;;  %v77_v22 = vld [vmem:[#allocation5 + $0xa0] sm:$0xff] }
  0x25   :  { %274 = vmatpush3.msra.mxu0 %v69_v7  ;;  %330 = vmatpush3.msra.mxu1 %v69_v7  ;;  %v61_v23 = vld [vmem:[#allocation5 + $0x20] sm:$0xff]  ;;  %v76_v24 = vld [vmem:[#allocation5 + $0x98] sm:$0xff]  ;;  %v75_v26 = vld [vmem:[#allocation5 + $0x90] sm:$0xff] }
  0x26   :  { %275 = vmatprep.subr.mxu0 %v84_v8  ;;  %315 = vmatprep.subr.mxu1 %v84_v8  ;;  %v60_v25 = vld [vmem:[#allocation5 + $0x18] sm:$0xff]  ;;  %v59_v27 = vld [vmem:[#allocation5 + $0x10] sm:$0xff]  ;;  %v74_v28 = vld [vmem:[#allocation5 + $0x88] sm:$0xff] }
  0x27   :  { %276 = vmatpush3.msra.mxu0 %v68_v9  ;;  %331 = vmatpush3.msra.mxu1 %v68_v9  ;;  %v58_v29 = vld [vmem:[#allocation5 + $0x8] sm:$0xff]  ;;  %v73_v30 = vld [vmem:[#allocation5 + $0x80] sm:$0xff]  ;;  %v52_v35 = vld [vmem:[#allocation2 + $0x18] sm:$0xff] }
  0x28   :  { %277 = vmatprep.subr.mxu0 %v83_v10  ;;  %316 = vmatprep.subr.mxu1 %v83_v10  ;;  %v50_v31 = vld [vmem:[#allocation2 + $0x8] sm:$0xff]  ;;  %v57_v32 = vld [vmem:[#allocation5] sm:$0xff]  ;;  %v56_v37 = vld [vmem:[#allocation2 + $0x38] sm:$0xff] }
  0x29   :  { %278 = vmatpush3.msra.mxu0 %v67_v11  ;;  %332 = vmatpush3.msra.mxu1 %v67_v11  ;;  %v49_v33 = vld [vmem:[#allocation2] sm:$0xff]  ;;  %v54_v34 = vld [vmem:[#allocation2 + $0x28] sm:$0xff]  ;;  %v51_v38 = vld [vmem:[#allocation2 + $0x10] sm:$0xff] }
  0x2a   :  { %279 = vmatprep.subr.mxu0 %v82_v12  ;;  %317 = vmatprep.subr.mxu1 %v82_v12  ;;  %v53_v36 = vld [vmem:[#allocation2 + $0x20] sm:$0xff]  ;;  %v55_v39 = vld [vmem:[#allocation2 + $0x30] sm:$0xff] }
  0x2b   :  { %280 = vmatpush3.msra.mxu0 %v66_v13  ;;  %333 = vmatpush3.msra.mxu1 %v66_v13  ;;  %v264_v46 = vld [vmem:[%s481_s2] ss:$0 sm:$0xff] }
  0x2c   :  { %281 = vmatprep.subr.mxu0 %v81_v14  ;;  %318 = vmatprep.subr.mxu1 %v81_v14 }
  0x2d   :  { %282 = vmatpush3.msra.mxu0 %v65_v15  ;;  %334 = vmatpush3.msra.mxu1 %v65_v15 }
  0x2e   :  { %283 = vmatprep.subr.mxu0 %v80_v16  ;;  %319 = vmatprep.subr.mxu1 %v80_v16 }
  0x2f   :  { %284 = vmatpush3.msra.mxu0 %v64_v17  ;;  %335 = vmatpush3.msra.mxu1 %v64_v17 }
  0x30   :  { %285 = vmatprep.subr.mxu0 %v79_v18  ;;  %320 = vmatprep.subr.mxu1 %v79_v18 }
  0x31   :  { %286 = vmatpush3.msra.mxu0 %v63_v19  ;;  %336 = vmatpush3.msra.mxu1 %v63_v19 }
  0x32   :  { %287 = vmatprep.subr.mxu0 %v78_v20  ;;  %321 = vmatprep.subr.mxu1 %v78_v20 }
  0x33   :  { %288 = vmatpush3.msra.mxu0 %v62_v21  ;;  %337 = vmatpush3.msra.mxu1 %v62_v21 }
  0x34   :  { %289 = vmatprep.subr.mxu0 %v77_v22  ;;  %322 = vmatprep.subr.mxu1 %v77_v22 }
  0x35   :  { %290 = vmatpush3.msra.mxu0 %v61_v23  ;;  %338 = vmatpush3.msra.mxu1 %v61_v23  ;;  %v265_v23 = vld [vmem:[%s482_s3] ss:$0 sm:$0xff]  ;;  %s392_s3 = scalar_lea.vmem %s252_s11, 512 }
  0x36   :  { %291 = vmatprep.subr.mxu0 %v76_v24  ;;  %323 = vmatprep.subr.mxu1 %v76_v24  ;;  %p393_p10 = scmp.ne.s32.totalorder %s252_s11, %s392_s3  ;;  %p398_p12 = scmp.lt.s32.totalorder %s392_s3, %s392_s3 }
  0x37   :  { %292 = vmatpush3.msra.mxu0 %v60_v25  ;;  %339 = vmatpush3.msra.mxu1 %v60_v25 }
  0x38   :  { %293 = vmatprep.subr.mxu0 %v75_v26  ;;  %324 = vmatprep.subr.mxu1 %v75_v26  ;;  %p399_p13 = por %p398_p12, %p397_p11 }
  0x39   :  { %294 = vmatpush3.msra.mxu0 %v59_v27  ;;  %340 = vmatpush3.msra.mxu1 %v59_v27 }
  0x3a   :  { %295 = vmatprep.subr.mxu0 %v74_v28  ;;  %325 = vmatprep.subr.mxu1 %v74_v28  ;;  %v266_v28 = vld [vmem:[%s483_s4] ss:$0 sm:$0xff]  ;;  %p400_p0 = pnand %p399_p13, %p393_p10 }
  0x3b   :  { %296 = vmatpush3.msra.mxu0 %v58_v29  ;;  %341 = vmatpush3.msra.mxu1 %v58_v29 }
  0x3c   :  { %297 = vmatprep.subr.mxu0 %v73_v30  ;;  %160 = vmatprep.mubr.f32.mxu0 %v50_v31 }
  0x3d   :  { %298 = vmatpush3.msra.mxu0 %v57_v32  ;;  %326 = vmatprep.subr.mxu1 %v73_v30 }
  0x3e   :  { %161 = vmatmul.mubr.f32.vlgmr.msra.gmra.mxu0 %v49_v33  ;;  %342 = vmatpush3.msra.mxu1 %v57_v32 }
  0x3f   :  { %170 = vmatprep.mubr.f32.mxu1 %v54_v34  ;;  %165 = vmatprep.mubr.f32.mxu0 %v52_v35 }
  0x40   :  { %171 = vmatmul.mubr.f32.vlgmr.msra.gmra.mxu1 %v53_v36 }
  0x41   :  { %175 = vmatprep.mubr.f32.mxu1 %v56_v37 }
  0x42   :  { %166 = vmatmul.mubr.f32.gmra.mxu0 %v51_v38 }
  0x44   :  { %176 = vmatmul.mubr.f32.gmra.mxu1 %v55_v39 }
  0xfe   :  { %v299_v40 = vpop.f32.mrf.mxu0 }
 0x100   :  { %v300_v41 = vpop.f32.mrf.mxu0  ;;  %v305_v42 = vpop.f32.mrf.mxu1 }
 0x101   :  { %v301_v45 = vadd.f32 %v300_v41, %v299_v40 }
 0x102   :  { %v302_v43 = vpop.f32.mrf.mxu0  ;;  %v306_v44 = vpop.f32.mrf.mxu1 }
 0x103   :  { %v307_v49 = vadd.f32 %v306_v44, %v305_v42  ;;  %v163_v52 = vadd.f32 %v301_v45, %v264_v46 }
 0x104   :  { %v303_v47 = vpop.f32.mrf.mxu0  ;;  %v308_v48 = vpop.f32.mrf.mxu1 }
 0x105   :  { %v304_v50 = vadd.f32 %v303_v47, %v302_v43  ;;  %v173_v55 = vadd.f32 %v307_v49, %v264_v46 }
 0x106   :  { %v309_v51 = vpop.f32.mrf.mxu1 }
 0x107   :  { %v168_v53 = vadd.f32 %v304_v50, %v264_v46  ;;  %v310_v54 = vadd.f32 %v309_v51, %v308_v48 }
 0x109   :  { %v181_v56 = vadd.f32 %v168_v53, %v163_v52  ;;  %v178_v57 = vadd.f32 %v310_v54, %v264_v46 }
 0x10b   :  { %v182_v58 = vadd.f32 %v181_v56, %v173_v55 }
 0x10d   :  { %v183_v59 = vadd.f32 %v182_v58, %v178_v57 }
 0x10f   :  { %v184_v60 = vrot.slane %v183_v59, 4 }
 0x111   :  { %v185_v61 = vadd.f32 %v184_v60, %v183_v59 }
 0x113   :  { %v186_v62 = vrot.slane %v185_v61, 2 }
 0x115   :  { %v187_v63 = vadd.f32 %v186_v62, %v185_v61 }
 0x117   :  { %v188_v0 = vrot.slane %v187_v63, 1 }
 0x119   :  { %v189_v1 = vadd.f32 %v188_v0, %v187_v63 }
 0x11b   :  { %v191_v2 = vmul.f32 0.03125, %v189_v1 }
 0x11d   :  { %v192_v3 = vsub.f32 %v163_v52, %v191_v2  ;;  %v193_v4 = vsub.f32 %v168_v53, %v191_v2  ;;  %v194_v5 = vsub.f32 %v173_v55, %v191_v2  ;;  %v195_v6 = vsub.f32 %v178_v57, %v191_v2 }
 0x11f   :  { %v196_v7 = vmul.f32 %v192_v3, %v192_v3  ;;  %v197_v8 = vmul.f32 %v193_v4, %v193_v4  ;;  %v198_v9 = vmul.f32 %v194_v5, %v194_v5  ;;  %v199_v11 = vmul.f32 %v195_v6, %v195_v6 }
 0x121   :  { %v200_v10 = vadd.f32 %v197_v8, %v196_v7 }
 0x123   :  { %v201_v12 = vadd.f32 %v200_v10, %v198_v9 }
 0x125   :  { %v202_v13 = vadd.f32 %v201_v12, %v199_v11 }
 0x127   :  { %v203_v14 = vrot.slane %v202_v13, 4 }
 0x129   :  { %v204_v15 = vadd.f32 %v203_v14, %v202_v13 }
 0x12b   :  { %v205_v16 = vrot.slane %v204_v15, 2 }
 0x12d   :  { %v206_v17 = vadd.f32 %v205_v16, %v204_v15 }
 0x12f   :  { %v207_v18 = vrot.slane %v206_v17, 1 }
 0x131   :  { %v208_v19 = vadd.f32 %v207_v18, %v206_v17 }
 0x133   :  { %v209_v20 = vmul.f32 0.03125, %v208_v19 }
 0x135   :  { %v210_v21 = vadd.f32 1e-05, %v209_v20 }
 0x137   :  { %350 = vrsqrt.f32 %v210_v21 }
 0x144   :  { %v351_v22 = vpop.eup %350 }
 0x145   :  { %v215_v24 = vmul.f32 %v351_v22, %v195_v6  ;;  %v212_v25 = vmul.f32 %v351_v22, %v192_v3  ;;  %v213_v26 = vmul.f32 %v351_v22, %v193_v4  ;;  %v214_v27 = vmul.f32 %v351_v22, %v194_v5 }
 0x147   :  { %v226_v29 = vmul.f32 %v265_v23, %v215_v24  ;;  %v223_v30 = vmul.f32 %v265_v23, %v212_v25  ;;  %v224_v31 = vmul.f32 %v265_v23, %v213_v26  ;;  %v225_v32 = vmul.f32 %v265_v23, %v214_v27 }
 0x149   :  { %v237_v33 = vadd.f32 %v266_v28, %v226_v29  ;;  %v234_v34 = vadd.f32 %v266_v28, %v223_v30  ;;  %v235_v35 = vadd.f32 %v266_v28, %v224_v31  ;;  %v236_v36 = vadd.f32 %v266_v28, %v225_v32 }
 0x14b   :  { %v238_v37 = vmax.f32 %v234_v34, 0.0  ;;  %v239_v38 = vmax.f32 %v235_v35, 0.0  ;;  %v240_v39 = vmax.f32 %v236_v36, 0.0  ;;  %v241_v40 = vmax.f32 %v237_v33, 0.0 }
 0x14d   :  { %242 = vst [vmem:[#allocation7] sm:$0xff] %v238_v37  ;;  %243 = vst [vmem:[#allocation7 + $0x8] sm:$0xff] %v239_v38 }
 0x14e   :  { %244 = vst [vmem:[#allocation7 + $0x10] sm:$0xff] %v240_v39  ;;  %245 = vst [vmem:[#allocation7 + $0x18] sm:$0xff] %v241_v40 }
 0x14f   :  { %403 = shalt.err (!%p400_p0)
}
 0x150   :  { %257 = dma.vmem_to_hbm [thread:$0]  %s252_s11, 512, %s484_s5, [#allocation4], %s422_s28, %s422_s28, %s423_s29  }
 0x151   :  { %416 = dma.done.wait [#allocation4], 512  }
 0x152   :  { %417 = vsyncadd [#allocation4], 4294966784 }
 0x153   :  { %261 = vsyncpa [#allocation3], 1 }
 0x154   :  { %262 = vsyncpa [#allocation6], 1 }
 0x155   :  { %263 = vsyncpa [#allocation4], 1 }

</bundles_post_ra>
